<compile_context>
chip_gen: v7x
topology: tpu7x:2x2x1
jax: 0.10.0
libtpu: 0.0.40
codegen_flags: <defaults>
</compile_context>

<pallas_src>
import jax
import jax.numpy as jnp
from jax.experimental import pallas as pl
from jax.experimental.pallas import tpu as pltpu

_LANE = 128


def _pooler_kernel(x_ref, w_ref, b_ref, o_ref):
    # x_ref: (TB, H)   w_ref: (O_pad, H)   b_ref: (1, O_pad)   o_ref: (TB, O_pad)
    # x @ W^T on the MXU: contract dim 1 of x against dim 1 of W (no wrapper
    # transpose needed), accumulate in f32.
    y = jax.lax.dot_general(
        x_ref[...],
        w_ref[...],
        dimension_numbers=(((1,), (1,)), ((), ())),
        preferred_element_type=jnp.float32,
    )
    y = y + b_ref[...]
    # sigmoid(y) == 0.5 * (tanh(y/2) + 1): tanh lowers to the EUP slot,
    # avoiding the VPU f32 divide/Newton sequence of a literal 1/(1+exp(-y)).
    o_ref[...] = (0.5 * (jnp.tanh(0.5 * y) + 1.0)).astype(o_ref.dtype)


def classifies_binary(hidden_states, weight, bias, *, block_b=512):
    """Pallas equivalent of ClassifiesBinary.forward.

    hidden_states: (seq, batch, hidden) float32
    weight:        (out_features, hidden)  -- PyTorch nn.Linear layout
    bias:          (out_features,)
    returns:       (batch, out_features) float32
    """
    S, B, H = hidden_states.shape
    O = weight.shape[0]

    # Lane-dense output: pad the head to a multiple of 128 output lanes so the
    # output store is an unmasked vst.  Parameter-side setup only.
    O_pad = max(_LANE, ((O + _LANE - 1) // _LANE) * _LANE)
    if O_pad != O:
        weight = jnp.pad(weight, ((0, O_pad - O), (0, 0)))
        bias = jnp.pad(bias, (0, O_pad - O))
    b2d = bias.reshape(1, O_pad)

    # 1-D grid over batch rows; weight/bias blocks index to (0, 0) every step
    # so they stay resident in VMEM while activation tiles stream.
    TB = min(B, block_b)
    nb = pl.cdiv(B, TB)

    cost = pl.CostEstimate(
        flops=2 * B * H * O_pad,
        transcendentals=B * O_pad,
        bytes_accessed=4 * (B * H + O_pad * H + O_pad + B * O_pad),
    )

    out = pl.pallas_call(
        _pooler_kernel,
        out_shape=jax.ShapeDtypeStruct((B, O_pad), jnp.float32),
        grid=(nb,),
        in_specs=[
            # Select the first token directly in the BlockSpec: no
            # hidden_states[0] temporary is materialized in HBM; the kernel
            # sees a (TB, H) tile.
            pl.BlockSpec((pl.Squeezed(), TB, H), lambda i: (0, i, 0)),
            pl.BlockSpec((O_pad, H), lambda i: (0, 0)),
            pl.BlockSpec((1, O_pad), lambda i: (0, 0)),
        ],
        out_specs=pl.BlockSpec((TB, O_pad), lambda i: (i, 0)),
        compiler_params=pltpu.CompilerParams(
            dimension_semantics=("parallel",),
            vmem_limit_bytes=32 * 1024 * 1024,
        ),
        cost_estimate=cost,
    )(hidden_states, weight, b2d)

    # Drop the padded lanes (cheap: B*O floats).
    return out[:, :O]


if __name__ == "__main__":
    # Small shapes implied by the module: seq=8, batch=2,
    # hidden_size (variables.dim) = 32, out_features (variables.emb_dim) = 16.
    seq, batch, hidden, out_features = 8, 2, 32, 16

    key = jax.random.PRNGKey(0)
    k_x, k_w, k_b = jax.random.split(key, 3)

    hidden_states = jax.random.normal(k_x, (seq, batch, hidden), dtype=jnp.float32)
    weight = jax.random.normal(k_w, (out_features, hidden), dtype=jnp.float32) * 0.05
    bias = jax.random.normal(k_b, (out_features,), dtype=jnp.float32) * 0.05

    result = jax.block_until_ready(classifies_binary(hidden_states, weight, bias))

    # Reference check in plain JAX (same math as the PyTorch module).
    ref = jax.nn.sigmoid(hidden_states[0] @ weight.T + bias)
    assert result.shape == (batch, out_features)
    assert jnp.allclose(result, ref, atol=1e-5, rtol=1e-5)

    print("KERNEL_OK")
</pallas_src>

<mosaic_0001>
module attributes {stable_mosaic.version = 11 : i64} {
  func.func @_pooler_kernel(%arg0: i32, %arg1: memref<1x2x32xf32, #tpu.memory_space<vmem>>, %arg2: memref<128x32xf32, #tpu.memory_space<vmem>>, %arg3: memref<1x128xf32, #tpu.memory_space<vmem>>, %arg4: memref<2x128xf32, #tpu.memory_space<vmem>>) attributes {dimension_semantics = [#tpu.dimension_semantics<parallel>], iteration_bounds = array<i64: 1>, scalar_prefetch = 0 : i64, scratch_operands = 0 : i64, tpu.core_type = #tpu.core_type<tc>, window_params = [{transform_indices = @transform_0, window_bounds = array<i64: 1, 2, 32>}, {pipeline_mode = #tpu.pipeline_mode<synchronous>, transform_indices = @transform_1, window_bounds = array<i64: 128, 32>}, {pipeline_mode = #tpu.pipeline_mode<synchronous>, transform_indices = @transform_2, window_bounds = array<i64: 1, 128>}, {transform_indices = @transform_3, window_bounds = array<i64: 2, 128>}]} {
    %c0 = arith.constant 0 : index
    %c0_0 = arith.constant 0 : index
    %c0_1 = arith.constant 0 : index
    %0 = vector.load %arg1[%c0, %c0_0, %c0_1] : memref<1x2x32xf32, #tpu.memory_space<vmem>>, vector<1x2x32xf32>
    %1 = vector.shape_cast %0 : vector<1x2x32xf32> to vector<2x32xf32>
    %c0_2 = arith.constant 0 : index
    %c0_3 = arith.constant 0 : index
    %2 = vector.load %arg2[%c0_2, %c0_3] : memref<128x32xf32, #tpu.memory_space<vmem>>, vector<128x32xf32>
    %cst = arith.constant dense<0.000000e+00> : vector<2x128xf32>
    %3 = tpu.matmul %1, %2, %cst {dimension_numbers = #tpu.dot_dimension_numbers<[1], [1], [0], [0], [0, 0, 1, 0], [], []>} : vector<2x32xf32>, vector<128x32xf32>, vector<2x128xf32> -> vector<2x128xf32>
    %c0_4 = arith.constant 0 : index
    %c0_5 = arith.constant 0 : index
    %4 = vector.load %arg3[%c0_4, %c0_5] : memref<1x128xf32, #tpu.memory_space<vmem>>, vector<1x128xf32>
    %5 = vector.broadcast %4 : vector<1x128xf32> to vector<2x128xf32>
    %6 = arith.addf %3, %5 : vector<2x128xf32>
    %cst_6 = arith.constant 5.000000e-01 : f32
    %7 = vector.broadcast %cst_6 : f32 to vector<2x128xf32>
    %8 = arith.mulf %7, %6 : vector<2x128xf32>
    %9 = math.tanh %8 : vector<2x128xf32>
    %cst_7 = arith.constant 1.000000e+00 : f32
    %10 = vector.broadcast %cst_7 : f32 to vector<2x128xf32>
    %11 = arith.addf %9, %10 : vector<2x128xf32>
    %cst_8 = arith.constant 5.000000e-01 : f32
    %12 = vector.broadcast %cst_8 : f32 to vector<2x128xf32>
    %13 = arith.mulf %12, %11 : vector<2x128xf32>
    %c0_9 = arith.constant 0 : index
    %c0_10 = arith.constant 0 : index
    %14 = vector.load %arg4[%c0_9, %c0_10] : memref<2x128xf32, #tpu.memory_space<vmem>>, vector<2x128xf32>
    tpu.vector_store %arg4[%c0_9, %c0_10], %13 {strides = array<i32>} : memref<2x128xf32, #tpu.memory_space<vmem>>, vector<2x128xf32>,
    return
  }
  func.func @transform_0(%arg0: i32) -> (i32, i32, i32) {
    %c0_i32 = arith.constant 0 : i32
    %c0_i32_0 = arith.constant 0 : i32
    %c0_i32_1 = arith.constant 0 : i32
    return %c0_i32, %arg0, %c0_i32_0 : i32, i32, i32
  }
  func.func @transform_1(%arg0: i32) -> (i32, i32) {
    %c0_i32 = arith.constant 0 : i32
    %c0_i32_0 = arith.constant 0 : i32
    %c0_i32_1 = arith.constant 0 : i32
    return %c0_i32, %c0_i32_0 : i32, i32
  }
  func.func @transform_2(%arg0: i32) -> (i32, i32) {
    %c0_i32 = arith.constant 0 : i32
    %c0_i32_0 = arith.constant 0 : i32
    %c0_i32_1 = arith.constant 0 : i32
    return %c0_i32, %c0_i32_0 : i32, i32
  }
  func.func @transform_3(%arg0: i32) -> (i32, i32) {
    %c0_i32 = arith.constant 0 : i32
    %c0_i32_0 = arith.constant 0 : i32
    return %arg0, %c0_i32 : i32, i32
  }
}

</mosaic_0001>

<bundles_post_ra>
// kernel: tpu_custom_call.1
= control target key start
LH: loop header
LB: loop body
LE: loop exit
PB: predicated region body
PF: predicated region fallthrough
CT: control target
= control target key end

     0   :  { %vm39_vm0 = vcmask 261120   ;;  %v312_v2 = vmov 0.0|0.0   ;;  %vm313_vm2 = vmmov 0   ;;  %v314_v5 = vmov 0.0   ;;  %s425_s0 = inlined_call_operand.vmem [shape: f32[8,2,32], index: 0, kind: input, shape index: {}]   ;;  %s426_s1 = inlined_call_operand.vmem [shape: f32[128,32], index: 1, kind: input, shape index: {}]   ;;  %s427_s2 = inlined_call_operand.vmem [shape: f32[1,128], index: 2, kind: input, shape index: {}]   ;;  %s428_s3 = inlined_call_operand.hbm [shape: f32[2,128], index: 3, kind: output, shape index: {}]  }
   0x1   :  { %v16_v0 = vld [vmem:[%s426_s1] sm:$0xff]  ;;  %v17_v1 = vld [vmem:[%s426_s1 + $0x8] sm:$0xff]  ;;  %250 = vmatprep.subr.bf16.mxu0 %v312_v2  ;;  %vm344_vm1 = vmpackc.low %vm39_vm0, %vm39_vm0  ;;  %247 = vmatprep.mubr.msk.f32.mxu0 %vm313_vm2, %v314_v5 }
   0x2   :  { %v251_v3 = vpack.c.bf16 %v17_v1, %v16_v0  ;;  %v18_v6 = vld [vmem:[%s426_s1 + $0x10] sm:$0xff]  ;;  %v19_v7 = vld [vmem:[%s426_s1 + $0x18] sm:$0xff] }
   0x4   :  { %253 = vmatpush3.bf16.xpose.msk.msra.mxu0 %vm344_vm1, %v251_v3 }
   0x5   :  { %254 = vmatprep.subr.bf16.mxu0 %v312_v2 }
   0x6   :  { %8 = vsyncpa [#allocation3], 0  ;;  %v255_v8 = vpack.c.bf16 %v19_v7, %v18_v6  ;;  %v20_v9 = vld [vmem:[%s426_s1 + $0x20] sm:$0xff]  ;;  %v21_v10 = vld [vmem:[%s426_s1 + $0x28] sm:$0xff] }
   0x7   :  { %v259_v11 = vpack.c.bf16 %v21_v10, %v20_v9  ;;  %v22_v12 = vld [vmem:[%s426_s1 + $0x30] sm:$0xff]  ;;  %v23_v13 = vld [vmem:[%s426_s1 + $0x38] sm:$0xff]  ;;  %v24_v15 = vld [vmem:[%s426_s1 + $0x40] sm:$0xff] }
   0x8   :  { %v263_v14 = vpack.c.bf16 %v23_v13, %v22_v12  ;;  %v25_v16 = vld [vmem:[%s426_s1 + $0x48] sm:$0xff]  ;;  %v26_v18 = vld [vmem:[%s426_s1 + $0x50] sm:$0xff]  ;;  %v27_v19 = vld [vmem:[%s426_s1 + $0x58] sm:$0xff] }
   0x9   :  { %v267_v17 = vpack.c.bf16 %v25_v16, %v24_v15  ;;  %v271_v20 = vpack.c.bf16 %v27_v19, %v26_v18  ;;  %v28_v21 = vld [vmem:[%s426_s1 + $0x60] sm:$0xff]  ;;  %v29_v22 = vld [vmem:[%s426_s1 + $0x68] sm:$0xff]  ;;  %v30_v24 = vld [vmem:[%s426_s1 + $0x70] sm:$0xff] }
   0xa   :  { %v275_v23 = vpack.c.bf16 %v29_v22, %v28_v21  ;;  %v31_v25 = vld [vmem:[%s426_s1 + $0x78] sm:$0xff]  ;;  %v15_v27 = vld [vmem:[%s425_s0] sm:$0x3]  ;;  %s315_s1 = smov [#allocation2]  }
   0xb   :  { %v279_v26 = vpack.c.bf16 %v31_v25, %v30_v24  ;;  %v180_v28 = vld [vmem:[%s427_s2] ss:$0 sm:$0xff]  ;;  %s172_s21 = sshll.u32 %s315_s1, 4  ;;  %s173_s21 = int_to_ptr.vmem [resolvable:$true] %s172_s21 }
   0xc   :  { %257 = vmatpush3.bf16.xpose.msk.msra.mxu0 %vm344_vm1, %v255_v8  ;;  %s288_s22 = scalar_lea.vmem %s173_s21, 32  ;;  %p293_p1 = scmp.lt.s32.totalorder %s173_s21, %s173_s21 }
   0xd   :  { %258 = vmatprep.subr.bf16.mxu0 %v312_v2  ;;  %p289_p0 = scmp.ne.s32.totalorder %s173_s21, %s288_s22  ;;  %p294_p2 = scmp.lt.s32.totalorder %s288_s22, %s288_s22 }
   0xf   :  { %p295_p3 = por %p294_p2, %p293_p1 }
  0x11   :  { %p296_p4 = pnand %p295_p3, %p289_p0 }
  0x14   :  { %261 = vmatpush3.bf16.xpose.msk.msra.mxu0 %vm344_vm1, %v259_v11 }
  0x15   :  { %262 = vmatprep.subr.bf16.mxu0 %v312_v2 }
  0x1c   :  { %265 = vmatpush3.bf16.xpose.msk.msra.mxu0 %vm344_vm1, %v263_v14 }
  0x1d   :  { %266 = vmatprep.subr.bf16.mxu0 %v312_v2 }
  0x24   :  { %269 = vmatpush3.bf16.xpose.msk.msra.mxu0 %vm344_vm1, %v267_v17 }
  0x25   :  { %270 = vmatprep.subr.bf16.mxu0 %v312_v2 }
  0x2c   :  { %273 = vmatpush3.bf16.xpose.msk.msra.mxu0 %vm344_vm1, %v271_v20 }
  0x2d   :  { %274 = vmatprep.subr.bf16.mxu0 %v312_v2 }
  0x34   :  { %277 = vmatpush3.bf16.xpose.msk.msra.mxu0 %vm344_vm1, %v275_v23 }
  0x35   :  { %278 = vmatprep.subr.bf16.mxu0 %v312_v2 }
  0x3c   :  { %281 = vmatpush3.bf16.xpose.msk.msra.mxu0 %vm344_vm1, %v279_v26 }
  0x43   :  { %248 = vmatmul.mubr.msk.f32.vlgmr.msra.gmra.mrb[0].mxu0 %vm39_vm0, %v15_v27 }
 0x116   :  { %v157_v29 = vpop.f32.mrb[0].mxu0 }
 0x117   :  { %v158_v30 = vadd.f32 %v180_v28, %v157_v29  ;;  %v249_v31 = vpop.f32.mrb[1].mxu0 }
 0x119   :  { %v161_v32 = vmul.f32 0.5, %v158_v30 }
 0x11b   :  { %286 = vtanh.f32 %v161_v32 }
 0x125   :  { %v287_v33 = vpop.eup %286 }
 0x126   :  { %v163_v34 = vadd.f32 1.0, %v287_v33 }
 0x128   :  { %v164_v35 = vmul.f32 0.5, %v163_v34 }
 0x12a   :  { %165 = vst [vmem:[#allocation2] sm:$0x3] %v164_v35 }
 0x12b   :  { %299 = shalt.err (!%p296_p4)
}
 0x12c   :  { %s300_s23 = scalar_lea.hbm %s428_s3, 32 }
 0x12d   :  { %p301_p5 = scmp.ne.s32.totalorder %s428_s3, %s300_s23  ;;  %p304_p6 = scmp.lt.u32.totalorder %s300_s23, %s428_s3 }
 0x12f   :  { %p306_p7 = pnand %p304_p6, %p301_p5 }
 0x131   :  { %309 = shalt.err (!%p306_p7)
}
 0x132   :  { %175 = dma.vmem_to_hbm [thread:$0]  %s173_s21, 32, %s428_s3, [#allocation3]  }
 0x133   :  { %310 = dma.done.wait [#allocation3], 32  }
 0x134   :  { %311 = vsyncadd [#allocation3], 4294967264 }
 0x135   :  { %179 = vsyncpa [#allocation3], 1 }

</bundles_post_ra>
